<compile_context>
chip_gen: v7x
topology: tpu7x:2x2x1
jax: 0.10.0
libtpu: 0.0.40
codegen_flags: <defaults>
</compile_context>

<pallas_src>
from functools import partial

import jax
import jax.numpy as jnp
from jax import lax
from jax.experimental import pallas as pl
from jax.experimental.pallas import tpu as pltpu

K = 3  # kernel_size (stride=1, padding=1, as in the PyTorch module)


def _round_up(x, m):
    return ((x + m - 1) // m) * m


def _pad_ring(v, c, kp):
    """(NB, H, W*c) -> (NB, H+2, kp): 1-pixel zero ring in the lane-folded
    (row, width*channel) layout, right-padded with zeros up to kp lanes."""
    nb, h, wc = v.shape
    left = jnp.zeros((nb, h, c), v.dtype)
    right = jnp.zeros((nb, h, kp - wc - c), v.dtype)
    mid = jnp.concatenate([left, v, right], axis=2)           # (NB, H, kp)
    row = jnp.zeros((nb, 1, kp), v.dtype)
    return jnp.concatenate([row, mid, row], axis=1)           # (NB, H+2, kp)


def _resblock_kernel(x_ref, a1_ref, b1_ref, a2_ref, b2_ref, out_ref,
                     xpad_ref, tpad_ref, *, W, Cin, Cout):
    # x_ref   : (NB, H, W*Cin)        lane-folded input tile (also the residual)
    # a1_ref  : (3, KP1, W*Cout)      banded conv1 weights (one matrix per kh)
    # a2_ref  : (3, KP2, W*Cout)      banded conv2 weights
    # b1_ref / b2_ref : (1, W*Cout)   per-lane bias rows
    # out_ref : (H, NB*W*Cout)        lane-dense output slab (128 lanes at NB=2)
    # xpad_ref: (NB, H+2, KP1) f32    zero-ring padded input
    # tpad_ref: (NB, H+2, KP2) f32    zero-ring padded relu(conv1(x))
    NB, H, _ = x_ref.shape
    KP1 = xpad_ref.shape[-1]
    KP2 = tpad_ref.shape[-1]
    WCo = W * Cout

    x = x_ref[...].astype(jnp.float32)

    # Zero halo for conv1: one dense full-width store (no separate zero pass).
    xpad_ref[...] = _pad_ring(x, Cin, KP1)

    # ---- conv1: 3 dots (NB*H, KP1) @ (KP1, W*Cout), one per kernel row kh ----
    acc = jnp.zeros((NB * H, WCo), jnp.float32)
    for kh in range(K):
        lhs = xpad_ref[:, kh:kh + H, :].reshape(NB * H, KP1)
        acc = acc + jnp.dot(lhs, a1_ref[kh], preferred_element_type=jnp.float32)
    t = jnp.maximum(acc + b1_ref[...], 0.0)          # Dropout2d (eval) == identity

    # conv2 zero-pads relu(conv1(x)) -> its halo ring must be exactly zero.
    tpad_ref[...] = _pad_ring(t.reshape(NB, H, WCo), Cout, KP2)

    # ---- conv2: 3 dots (NB*H, KP2) @ (KP2, W*Cout) ----
    acc = jnp.zeros((NB * H, WCo), jnp.float32)
    for kh in range(K):
        lhs = tpad_ref[:, kh:kh + H, :].reshape(NB * H, KP2)
        acc = acc + jnp.dot(lhs, a2_ref[kh], preferred_element_type=jnp.float32)
    y = jnp.maximum(acc + b2_ref[...], 0.0)          # Dropout2d (eval) == identity

    # Residual (Cin == Cout, identical lane layout), then one lane-dense store.
    y = (y + x.reshape(NB * H, W * Cin)).reshape(NB, H, WCo)
    out_ref[...] = jnp.concatenate([y[n] for n in range(NB)],
                                   axis=-1).astype(out_ref.dtype)


def _banded_weights(w, W, kp):
    """PyTorch OIHW (Cout, Cin, 3, 3) -> (3, kp, W*Cout) banded matrices A with
    A[kh, p*Cin+ci, w*Cout+co] = w[co, ci, kh, p-w] for 0 <= p-w < 3, so that
    conv(x)[h, w*Cout+co] = sum_kh xpad_row[h+kh, :] @ A[kh]  (lane = p*Cin+ci)."""
    Cout, Cin = w.shape[0], w.shape[1]
    w_t = jnp.transpose(w, (2, 3, 1, 0))                      # (kh, kw, Cin, Cout)
    q = jnp.arange(W + 2)[None, :, None]
    col = jnp.arange(W)[None, None, :]
    kw = jnp.arange(K)[:, None, None]
    shift = (q == col + kw).astype(w.dtype)                   # (kw, W+2, W)
    a = jnp.einsum("kqw,hkio->hqiwo", shift, w_t)             # (3, W+2, Cin, W, Cout)
    a = a.reshape(K, (W + 2) * Cin, W * Cout)
    a = jnp.pad(a, ((0, 0), (0, kp - (W + 2) * Cin), (0, 0)))  # pad dot-K to 128
    return a.astype(jnp.float32)


@jax.jit
def resblock_forward(x_nchw, w1, b1, w2, b2):
    """x_nchw: (N, C, H, W); w1/w2 in PyTorch layout (Cout, Cin, 3, 3); b (Cout,)."""
    N, Cin, H, W = x_nchw.shape
    Cout = w1.shape[0]
    assert Cin == Cout, "residual add requires in_channels == out_channels"

    # Batch tile per grid step: whole batch at N==2 (one step), otherwise pairs,
    # which keeps >=2 parallel grid steps for multi-TensorCore chips when N >= 4.
    NB = 2 if N % 2 == 0 else 1
    n_steps = N // NB

    kp1 = _round_up((W + 2) * Cin, 128)   # dot K padded to a full 128-lane tile
    kp2 = _round_up((W + 2) * Cout, 128)

    # NCHW -> (N, H, W*C): channels folded into the lane axis.
    x_rows = jnp.transpose(x_nchw, (0, 2, 3, 1)).reshape(N, H, W * Cin)

    a1 = _banded_weights(w1, W, kp1)
    a2 = _banded_weights(w2, W, kp2)
    b1_row = jnp.tile(b1, W).reshape(1, W * Cout).astype(jnp.float32)
    b2_row = jnp.tile(b2, W).reshape(1, W * Cout).astype(jnp.float32)

    kernel = partial(_resblock_kernel, W=W, Cin=Cin, Cout=Cout)

    out = pl.pallas_call(
        kernel,
        out_shape=jax.ShapeDtypeStruct((n_steps, H, NB * W * Cout), x_nchw.dtype),
        grid_spec=pltpu.PrefetchScalarGridSpec(
            num_scalar_prefetch=0,
            grid=(n_steps,),
            in_specs=[
                pl.BlockSpec((NB, H, W * Cin), lambda s: (s, 0, 0)),
                pl.BlockSpec((K, kp1, W * Cout), lambda s: (0, 0, 0)),
                pl.BlockSpec((1, W * Cout), lambda s: (0, 0)),
                pl.BlockSpec((K, kp2, W * Cout), lambda s: (0, 0, 0)),
                pl.BlockSpec((1, W * Cout), lambda s: (0, 0)),
            ],
            out_specs=pl.BlockSpec((None, H, NB * W * Cout), lambda s: (s, 0, 0)),
            scratch_shapes=[
                pltpu.VMEM((NB, H + 2, kp1), jnp.float32),
                pltpu.VMEM((NB, H + 2, kp2), jnp.float32),
            ],
        ),
        compiler_params=pltpu.CompilerParams(
            dimension_semantics=("parallel",)),
    )(x_rows, a1, b1_row, a2, b2_row)

    # (steps, H, NB*W*Cout) -> (N, Cout, H, W) to match PyTorch.
    out = out.reshape(n_steps, H, NB, W, Cout)
    out = jnp.transpose(out, (0, 2, 4, 1, 3))
    return out.reshape(N, Cout, H, W)


def _reference_forward(x_nchw, w1, b1, w2, b2):
    """Plain-JAX reference of the PyTorch forward (eval mode)."""
    def conv(x, w, b):
        y = lax.conv_general_dilated(
            x, w, window_strides=(1, 1), padding=((1, 1), (1, 1)),
            dimension_numbers=("NCHW", "OIHW", "NCHW"),
            precision=lax.Precision.HIGHEST)
        return y + b.reshape(1, -1, 1, 1)

    out = jnp.maximum(conv(x_nchw, w1, b1), 0.0)
    out = jnp.maximum(conv(out, w2, b2), 0.0)
    return out + x_nchw


if __name__ == "__main__":
    # Small shapes: batch=2, in_channels=out_channels=4, spatial=16
    N, C, H, W = 2, 4, 16, 16

    key = jax.random.PRNGKey(0)
    kx, k1, kb1, k2, kb2 = jax.random.split(key, 5)

    x = jax.random.normal(kx, (N, C, H, W), dtype=jnp.float32)
    # deterministic parameter init (shapes from nn.Conv2d(C, C, 3, 1, 1))
    w1 = 0.1 * jax.random.normal(k1, (C, C, K, K), dtype=jnp.float32)
    b1 = 0.1 * jax.random.normal(kb1, (C,), dtype=jnp.float32)
    w2 = 0.1 * jax.random.normal(k2, (C, C, K, K), dtype=jnp.float32)
    b2 = 0.1 * jax.random.normal(kb2, (C,), dtype=jnp.float32)

    out = jax.block_until_ready(resblock_forward(x, w1, b1, w2, b2))
    ref = _reference_forward(x, w1, b1, w2, b2)

    assert out.shape == (N, C, H, W), out.shape
    err = float(jnp.max(jnp.abs(out - ref)))
    # Tolerance covers possible bf16-pass MXU evaluation of the f32 dots vs the
    # HIGHEST-precision XLA reference; genuine layout/halo bugs are O(0.1 - 1).
    assert err < 1e-2, f"max |out - ref| = {err}"

    print("KERNEL_OK")
</pallas_src>

<mosaic_0001>
module attributes {stable_mosaic.version = 11 : i64} {
  func.func @_resblock_kernel(%arg0: i32, %arg1: memref<2x16x64xf32, #tpu.memory_space<vmem>>, %arg2: memref<3x128x64xf32, #tpu.memory_space<vmem>>, %arg3: memref<1x64xf32, #tpu.memory_space<vmem>>, %arg4: memref<3x128x64xf32, #tpu.memory_space<vmem>>, %arg5: memref<1x64xf32, #tpu.memory_space<vmem>>, %arg6: memref<1x16x128xf32, #tpu.memory_space<vmem>>, %arg7: memref<2x18x128xf32, #tpu.memory_space<vmem>>, %arg8: memref<2x18x128xf32, #tpu.memory_space<vmem>>) attributes {dimension_semantics = [#tpu.dimension_semantics<parallel>], iteration_bounds = array<i64: 1>, scalar_prefetch = 0 : i64, scratch_operands = 2 : i64, tpu.core_type = #tpu.core_type<tc>, window_params = [{transform_indices = @transform_0, window_bounds = array<i64: 2, 16, 64>}, {pipeline_mode = #tpu.pipeline_mode<synchronous>, transform_indices = @transform_1, window_bounds = array<i64: 3, 128, 64>}, {pipeline_mode = #tpu.pipeline_mode<synchronous>, transform_indices = @transform_2, window_bounds = array<i64: 1, 64>}, {pipeline_mode = #tpu.pipeline_mode<synchronous>, transform_indices = @transform_3, window_bounds = array<i64: 3, 128, 64>}, {pipeline_mode = #tpu.pipeline_mode<synchronous>, transform_indices = @transform_4, window_bounds = array<i64: 1, 64>}, {transform_indices = @transform_5, window_bounds = array<i64: 1, 16, 128>}]} {
    %c0 = arith.constant 0 : index
    %c0_0 = arith.constant 0 : index
    %c0_1 = arith.constant 0 : index
    %0 = vector.load %arg1[%c0, %c0_0, %c0_1] : memref<2x16x64xf32, #tpu.memory_space<vmem>>, vector<2x16x64xf32>
    %cst = arith.constant 0.000000e+00 : f32
    %1 = vector.broadcast %cst : f32 to vector<2x16x4xf32>
    %cst_2 = arith.constant 0.000000e+00 : f32
    %2 = vector.broadcast %cst_2 : f32 to vector<2x16x60xf32>
    %3 = tpu.concatenate %1, %0, %2 in 2 : vector<2x16x4xf32>, vector<2x16x64xf32>, vector<2x16x60xf32> -> vector<2x16x128xf32>
    %cst_3 = arith.constant 0.000000e+00 : f32
    %4 = vector.broadcast %cst_3 : f32 to vector<2x1x128xf32>
    %5 = tpu.concatenate %4, %3, %4 in 1 : vector<2x1x128xf32>, vector<2x16x128xf32>, vector<2x1x128xf32> -> vector<2x18x128xf32>
    %c0_4 = arith.constant 0 : index
    %c0_5 = arith.constant 0 : index
    %c0_6 = arith.constant 0 : index
    %6 = vector.load %arg7[%c0_4, %c0_5, %c0_6] : memref<2x18x128xf32, #tpu.memory_space<vmem>>, vector<2x18x128xf32>
    tpu.vector_store %arg7[%c0_4, %c0_5, %c0_6], %5 {strides = array<i32>} : memref<2x18x128xf32, #tpu.memory_space<vmem>>, vector<2x18x128xf32>,
    %cst_7 = arith.constant 0.000000e+00 : f32
    %7 = vector.broadcast %cst_7 : f32 to vector<32x64xf32>
    %c0_8 = arith.constant 0 : index
    %c0_9 = arith.constant 0 : index
    %c0_10 = arith.constant 0 : index
    %8 = vector.load %arg7[%c0_8, %c0_9, %c0_10] : memref<2x18x128xf32, #tpu.memory_space<vmem>>, vector<2x16x128xf32>
    %9 = vector.shape_cast %8 : vector<2x16x128xf32> to vector<32x128xf32>
    %c0_11 = arith.constant 0 : index
    %c0_12 = arith.constant 0 : index
    %c0_13 = arith.constant 0 : index
    %10 = vector.load %arg2[%c0_11, %c0_12, %c0_13] : memref<3x128x64xf32, #tpu.memory_space<vmem>>, vector<1x128x64xf32>
    %11 = vector.shape_cast %10 : vector<1x128x64xf32> to vector<128x64xf32>
    %cst_14 = arith.constant dense<0.000000e+00> : vector<32x64xf32>
    %12 = tpu.matmul %9, %11, %cst_14 {dimension_numbers = #tpu.dot_dimension_numbers<[1], [0], [0], [1], [0, 0, 1, 1], [], []>} : vector<32x128xf32>, vector<128x64xf32>, vector<32x64xf32> -> vector<32x64xf32>
    %13 = arith.addf %7, %12 : vector<32x64xf32>
    %c0_15 = arith.constant 0 : index
    %c1 = arith.constant 1 : index
    %c0_16 = arith.constant 0 : index
    %14 = vector.load %arg7[%c0_15, %c1, %c0_16] : memref<2x18x128xf32, #tpu.memory_space<vmem>>, vector<2x16x128xf32>
    %15 = vector.shape_cast %14 : vector<2x16x128xf32> to vector<32x128xf32>
    %c1_17 = arith.constant 1 : index
    %c0_18 = arith.constant 0 : index
    %c0_19 = arith.constant 0 : index
    %16 = vector.load %arg2[%c1_17, %c0_18, %c0_19] : memref<3x128x64xf32, #tpu.memory_space<vmem>>, vector<1x128x64xf32>
    %17 = vector.shape_cast %16 : vector<1x128x64xf32> to vector<128x64xf32>
    %cst_20 = arith.constant dense<0.000000e+00> : vector<32x64xf32>
    %18 = tpu.matmul %15, %17, %cst_20 {dimension_numbers = #tpu.dot_dimension_numbers<[1], [0], [0], [1], [0, 0, 1, 1], [], []>} : vector<32x128xf32>, vector<128x64xf32>, vector<32x64xf32> -> vector<32x64xf32>
    %19 = arith.addf %13, %18 : vector<32x64xf32>
    %c0_21 = arith.constant 0 : index
    %c2 = arith.constant 2 : index
    %c0_22 = arith.constant 0 : index
    %20 = vector.load %arg7[%c0_21, %c2, %c0_22] : memref<2x18x128xf32, #tpu.memory_space<vmem>>, vector<2x16x128xf32>
    %21 = vector.shape_cast %20 : vector<2x16x128xf32> to vector<32x128xf32>
    %c2_23 = arith.constant 2 : index
    %c0_24 = arith.constant 0 : index
    %c0_25 = arith.constant 0 : index
    %22 = vector.load %arg2[%c2_23, %c0_24, %c0_25] : memref<3x128x64xf32, #tpu.memory_space<vmem>>, vector<1x128x64xf32>
    %23 = vector.shape_cast %22 : vector<1x128x64xf32> to vector<128x64xf32>
    %cst_26 = arith.constant dense<0.000000e+00> : vector<32x64xf32>
    %24 = tpu.matmul %21, %23, %cst_26 {dimension_numbers = #tpu.dot_dimension_numbers<[1], [0], [0], [1], [0, 0, 1, 1], [], []>} : vector<32x128xf32>, vector<128x64xf32>, vector<32x64xf32> -> vector<32x64xf32>
    %25 = arith.addf %19, %24 : vector<32x64xf32>
    %c0_27 = arith.constant 0 : index
    %c0_28 = arith.constant 0 : index
    %26 = vector.load %arg3[%c0_27, %c0_28] : memref<1x64xf32, #tpu.memory_space<vmem>>, vector<1x64xf32>
    %27 = vector.broadcast %26 : vector<1x64xf32> to vector<32x64xf32>
    %28 = arith.addf %25, %27 : vector<32x64xf32>
    %cst_29 = arith.constant 0.000000e+00 : f32
    %29 = vector.broadcast %cst_29 : f32 to vector<32x64xf32>
    %30 = arith.maximumf %28, %29 : vector<32x64xf32>
    %31 = vector.shape_cast %30 : vector<32x64xf32> to vector<2x16x64xf32>
    %cst_30 = arith.constant 0.000000e+00 : f32
    %32 = vector.broadcast %cst_30 : f32 to vector<2x16x4xf32>
    %cst_31 = arith.constant 0.000000e+00 : f32
    %33 = vector.broadcast %cst_31 : f32 to vector<2x16x60xf32>
    %34 = tpu.concatenate %32, %31, %33 in 2 : vector<2x16x4xf32>, vector<2x16x64xf32>, vector<2x16x60xf32> -> vector<2x16x128xf32>
    %cst_32 = arith.constant 0.000000e+00 : f32
    %35 = vector.broadcast %cst_32 : f32 to vector<2x1x128xf32>
    %36 = tpu.concatenate %35, %34, %35 in 1 : vector<2x1x128xf32>, vector<2x16x128xf32>, vector<2x1x128xf32> -> vector<2x18x128xf32>
    %c0_33 = arith.constant 0 : index
    %c0_34 = arith.constant 0 : index
    %c0_35 = arith.constant 0 : index
    %37 = vector.load %arg8[%c0_33, %c0_34, %c0_35] : memref<2x18x128xf32, #tpu.memory_space<vmem>>, vector<2x18x128xf32>
    tpu.vector_store %arg8[%c0_33, %c0_34, %c0_35], %36 {strides = array<i32>} : memref<2x18x128xf32, #tpu.memory_space<vmem>>, vector<2x18x128xf32>,
    %cst_36 = arith.constant 0.000000e+00 : f32
    %38 = vector.broadcast %cst_36 : f32 to vector<32x64xf32>
    %c0_37 = arith.constant 0 : index
    %c0_38 = arith.constant 0 : index
    %c0_39 = arith.constant 0 : index
    %39 = vector.load %arg8[%c0_37, %c0_38, %c0_39] : memref<2x18x128xf32, #tpu.memory_space<vmem>>, vector<2x16x128xf32>
    %40 = vector.shape_cast %39 : vector<2x16x128xf32> to vector<32x128xf32>
    %c0_40 = arith.constant 0 : index
    %c0_41 = arith.constant 0 : index
    %c0_42 = arith.constant 0 : index
    %41 = vector.load %arg4[%c0_40, %c0_41, %c0_42] : memref<3x128x64xf32, #tpu.memory_space<vmem>>, vector<1x128x64xf32>
    %42 = vector.shape_cast %41 : vector<1x128x64xf32> to vector<128x64xf32>
    %cst_43 = arith.constant dense<0.000000e+00> : vector<32x64xf32>
    %43 = tpu.matmul %40, %42, %cst_43 {dimension_numbers = #tpu.dot_dimension_numbers<[1], [0], [0], [1], [0, 0, 1, 1], [], []>} : vector<32x128xf32>, vector<128x64xf32>, vector<32x64xf32> -> vector<32x64xf32>
    %44 = arith.addf %38, %43 : vector<32x64xf32>
    %c0_44 = arith.constant 0 : index
    %c1_45 = arith.constant 1 : index
    %c0_46 = arith.constant 0 : index
    %45 = vector.load %arg8[%c0_44, %c1_45, %c0_46] : memref<2x18x128xf32, #tpu.memory_space<vmem>>, vector<2x16x128xf32>
    %46 = vector.shape_cast %45 : vector<2x16x128xf32> to vector<32x128xf32>
    %c1_47 = arith.constant 1 : index
    %c0_48 = arith.constant 0 : index
    %c0_49 = arith.constant 0 : index
    %47 = vector.load %arg4[%c1_47, %c0_48, %c0_49] : memref<3x128x64xf32, #tpu.memory_space<vmem>>, vector<1x128x64xf32>
    %48 = vector.shape_cast %47 : vector<1x128x64xf32> to vector<128x64xf32>
    %cst_50 = arith.constant dense<0.000000e+00> : vector<32x64xf32>
    %49 = tpu.matmul %46, %48, %cst_50 {dimension_numbers = #tpu.dot_dimension_numbers<[1], [0], [0], [1], [0, 0, 1, 1], [], []>} : vector<32x128xf32>, vector<128x64xf32>, vector<32x64xf32> -> vector<32x64xf32>
    %50 = arith.addf %44, %49 : vector<32x64xf32>
    %c0_51 = arith.constant 0 : index
    %c2_52 = arith.constant 2 : index
    %c0_53 = arith.constant 0 : index
    %51 = vector.load %arg8[%c0_51, %c2_52, %c0_53] : memref<2x18x128xf32, #tpu.memory_space<vmem>>, vector<2x16x128xf32>
    %52 = vector.shape_cast %51 : vector<2x16x128xf32> to vector<32x128xf32>
    %c2_54 = arith.constant 2 : index
    %c0_55 = arith.constant 0 : index
    %c0_56 = arith.constant 0 : index
    %53 = vector.load %arg4[%c2_54, %c0_55, %c0_56] : memref<3x128x64xf32, #tpu.memory_space<vmem>>, vector<1x128x64xf32>
    %54 = vector.shape_cast %53 : vector<1x128x64xf32> to vector<128x64xf32>
    %cst_57 = arith.constant dense<0.000000e+00> : vector<32x64xf32>
    %55 = tpu.matmul %52, %54, %cst_57 {dimension_numbers = #tpu.dot_dimension_numbers<[1], [0], [0], [1], [0, 0, 1, 1], [], []>} : vector<32x128xf32>, vector<128x64xf32>, vector<32x64xf32> -> vector<32x64xf32>
    %56 = arith.addf %50, %55 : vector<32x64xf32>
    %c0_58 = arith.constant 0 : index
    %c0_59 = arith.constant 0 : index
    %57 = vector.load %arg5[%c0_58, %c0_59] : memref<1x64xf32, #tpu.memory_space<vmem>>, vector<1x64xf32>
    %58 = vector.broadcast %57 : vector<1x64xf32> to vector<32x64xf32>
    %59 = arith.addf %56, %58 : vector<32x64xf32>
    %cst_60 = arith.constant 0.000000e+00 : f32
    %60 = vector.broadcast %cst_60 : f32 to vector<32x64xf32>
    %61 = arith.maximumf %59, %60 : vector<32x64xf32>
    %62 = vector.shape_cast %0 : vector<2x16x64xf32> to vector<32x64xf32>
    %63 = arith.addf %61, %62 : vector<32x64xf32>
    %64 = vector.shape_cast %63 : vector<32x64xf32> to vector<2x16x64xf32>
    %65 = vector.extract_strided_slice %64 {offsets = [0, 0, 0], sizes = [1, 16, 64], strides = [1, 1, 1]} : vector<2x16x64xf32> to vector<1x16x64xf32>
    %66 = vector.shape_cast %65 : vector<1x16x64xf32> to vector<16x64xf32>
    %67 = vector.extract_strided_slice %64 {offsets = [1, 0, 0], sizes = [1, 16, 64], strides = [1, 1, 1]} : vector<2x16x64xf32> to vector<1x16x64xf32>
    %68 = vector.shape_cast %67 : vector<1x16x64xf32> to vector<16x64xf32>
    %69 = tpu.concatenate %66, %68 in 1 : vector<16x64xf32>, vector<16x64xf32> -> vector<16x128xf32>
    %c0_61 = arith.constant 0 : index
    %c0_62 = arith.constant 0 : index
    %c0_63 = arith.constant 0 : index
    %70 = vector.load %arg6[%c0_61, %c0_62, %c0_63] : memref<1x16x128xf32, #tpu.memory_space<vmem>>, vector<1x16x128xf32>
    %71 = vector.shape_cast %70 : vector<1x16x128xf32> to vector<16x128xf32>
    %72 = vector.shape_cast %69 : vector<16x128xf32> to vector<1x16x128xf32>
    tpu.vector_store %arg6[%c0_61, %c0_62, %c0_63], %72 {strides = array<i32>} : memref<1x16x128xf32, #tpu.memory_space<vmem>>, vector<1x16x128xf32>,
    return
  }
  func.func @transform_0(%arg0: i32) -> (i32, i32, i32) {
    %c0_i32 = arith.constant 0 : i32
    %c0_i32_0 = arith.constant 0 : i32
    %c0_i32_1 = arith.constant 0 : i32
    return %arg0, %c0_i32, %c0_i32_0 : i32, i32, i32
  }
  func.func @transform_1(%arg0: i32) -> (i32, i32, i32) {
    %c0_i32 = arith.constant 0 : i32
    %c0_i32_0 = arith.constant 0 : i32
    %c0_i32_1 = arith.constant 0 : i32
    %c0_i32_2 = arith.constant 0 : i32
    return %c0_i32, %c0_i32_0, %c0_i32_1 : i32, i32, i32
  }
  func.func @transform_2(%arg0: i32) -> (i32, i32) {
    %c0_i32 = arith.constant 0 : i32
    %c0_i32_0 = arith.constant 0 : i32
    %c0_i32_1 = arith.constant 0 : i32
    return %c0_i32, %c0_i32_0 : i32, i32
  }
  func.func @transform_3(%arg0: i32) -> (i32, i32, i32) {
    %c0_i32 = arith.constant 0 : i32
    %c0_i32_0 = arith.constant 0 : i32
    %c0_i32_1 = arith.constant 0 : i32
    %c0_i32_2 = arith.constant 0 : i32
    return %c0_i32, %c0_i32_0, %c0_i32_1 : i32, i32, i32
  }
  func.func @transform_4(%arg0: i32) -> (i32, i32) {
    %c0_i32 = arith.constant 0 : i32
    %c0_i32_0 = arith.constant 0 : i32
    %c0_i32_1 = arith.constant 0 : i32
    return %c0_i32, %c0_i32_0 : i32, i32
  }
  func.func @transform_5(%arg0: i32) -> (i32, i32, i32) {
    %c0_i32 = arith.constant 0 : i32
    %c0_i32_0 = arith.constant 0 : i32
    %c0_i32_1 = arith.constant 0 : i32
    return %arg0, %c0_i32, %c0_i32_0 : i32, i32, i32
  }
}

</mosaic_0001>

<bundles_post_ra>
// kernel: tile.13
= control target key start
LH: loop header
LB: loop body
LE: loop exit
PB: predicated region body
PF: predicated region fallthrough
CT: control target
= control target key end

     0   :  { %s28_s0 = inlined_call_operand.vmem [shape: f32[4], index: 0, kind: input, shape index: {}]   ;;  %s29_s1 = inlined_call_operand.vmem [shape: f32[16,4], index: 1, kind: output, shape index: {}]  }
   0x1   :  { %v4_v0 = vld [vmem:[%s28_s0] ss:$0 sm:$0xff] }
   0x2   :  { %5 = vst [vmem:[%s29_s1] sm:$0xff] %v4_v0  ;;  %8 = vst [vmem:[%s29_s1 + $0x8] sm:$0xff] %v4_v0 }

// kernel: tile.14
= control target key start
LH: loop header
LB: loop body
LE: loop exit
PB: predicated region body
PF: predicated region fallthrough
CT: control target
= control target key end

     0   :  { %s131_s10 = smov 60   ;;  %s132_s11 = smov 52   ;;  %vm3_vm0 = vcmask 31744   ;;  %vm9_vm1 = vcmask 523744   ;;  %vm15_vm2 = vcmask 490944   ;;  %vm21_vm3 = vcmask 458144   ;;  %s207_s0 = inlined_call_operand.vmem [shape: f32[16,4], index: 0, kind: input, shape index: {}]   ;;  %s208_s1 = inlined_call_operand.vmem [shape: f32[1,64], index: 1, kind: output, shape index: {}]  }
   0x1   :  { %v101_v0 = vld [vmem:[%s207_s0 + $0xf] sm:$0x1]   ;;  %v103_v1 = vld [vmem:[%s207_s0 + $0xd] sm:$0x1]   ;;  %v102_v2 = vld [vmem:[%s207_s0 + $0xe] sm:$0x1]  }
   0x2   :  { %7 = vrot.lane.b32.xlu0 %v101_v0, %s131_s10  ;;  %19 = vrot.lane.b32.xlu1 %v103_v1, %s132_s11  ;;  %v104_v3 = vld [vmem:[%s207_s0 + $0xc] sm:$0x1]   ;;  %s133_s16 = smov 56   ;;  %s134_s17 = smov 48   ;;  %v105_v4 = vld [vmem:[%s207_s0 + $0xb] sm:$0x1]  }
   0x3   :  { %v106_v5 = vld [vmem:[%s207_s0 + $0xa] sm:$0x1]   ;;  %v2_v6 = vld [vmem:[%s207_s0] sm:$0x1]   ;;  %s135_s24 = smov 44   ;;  %s136_s25 = smov 40  }
   0x4   :  { %4 = vst.msk [vmem:[#allocation0] sm:$0x1] %vm3_vm0, %v2_v6   ;;  %v107_v7 = vld [vmem:[%s207_s0 + $0x9] sm:$0x1]   ;;  %v108_v8 = vld [vmem:[%s207_s0 + $0x8] sm:$0x1]  }
   0x5   :  { %s137_s30 = smov 36   ;;  %s138_s2 = smov 32   ;;  %v109_v9 = vld [vmem:[%s207_s0 + $0x7] sm:$0x1]   ;;  %v110_v10 = vld [vmem:[%s207_s0 + $0x6] sm:$0x1]  }
   0x6   :  { %13 = vrot.lane.b32.xlu0 %v102_v2, %s133_s16  ;;  %25 = vrot.lane.b32.xlu1 %v104_v3, %s134_s17  ;;  %s139_s7 = smov 28   ;;  %s140_s8 = smov 24   ;;  %v111_v11 = vld [vmem:[%s207_s0 + $0x5] sm:$0x1]   ;;  %v112_v12 = vld [vmem:[%s207_s0 + $0x4] sm:$0x1]  }
   0x7   :  { %s141_s13 = smov 20   ;;  %s142_s14 = smov 16   ;;  %v113_v13 = vld [vmem:[%s207_s0 + $0x3] sm:$0x1]   ;;  %v114_v14 = vld [vmem:[%s207_s0 + $0x2] sm:$0x1]  }
   0x8   :  { %s143_s19 = smov 12   ;;  %s144_s20 = smov 8   ;;  %v115_v15 = vld [vmem:[%s207_s0 + $0x1] sm:$0x1]   ;;  %vm27_vm4 = vcmask 425344   ;;  %vm33_vm5 = vcmask 392544  }
   0x9   :  { %s145_s0 = smov 4   ;;  %vm39_vm6 = vcmask 359744   ;;  %vm45_vm7 = vcmask 326944   ;;  %vm51_vm8 = vcmask 294144   ;;  %vm57_vm9 = vcmask 261344  }
   0xa   :  { %31 = vrot.lane.b32.xlu0 %v105_v4, %s135_s24  ;;  %37 = vrot.lane.b32.xlu1 %v106_v5, %s136_s25  ;;  %vm63_vm10 = vcmask 228544   ;;  %vm69_vm11 = vcmask 195744   ;;  %vm75_vm12 = vcmask 162944   ;;  %vm81_vm13 = vcmask 130144  }
   0xb   :  { %vm87_vm14 = vcmask 97344   ;;  %vm93_vm15 = vcmask 64544  }
   0xe   :  { %43 = vrot.lane.b32.xlu0 %v107_v7, %s137_s30  ;;  %49 = vrot.lane.b32.xlu1 %v108_v8, %s138_s2 }
  0x12   :  { %55 = vrot.lane.b32.xlu0 %v109_v9, %s139_s7  ;;  %61 = vrot.lane.b32.xlu1 %v110_v10, %s140_s8 }
  0x16   :  { %67 = vrot.lane.b32.xlu0 %v111_v11, %s141_s13  ;;  %73 = vrot.lane.b32.xlu1 %v112_v12, %s142_s14 }
  0x1a   :  { %79 = vrot.lane.b32.xlu0 %v113_v13, %s143_s19  ;;  %85 = vrot.lane.b32.xlu1 %v114_v14, %s144_s20 }
  0x1e   :  { %91 = vrot.lane.b32.xlu0 %v115_v15, %s145_s0 }
  0x74   :  { %v8_v16 = vpop.permute.xlu0 %7   ;;  %v20_v17 = vpop.permute.xlu1 %19  }
  0x75   :  { %10 = vst.msk [vmem:[#allocation0] sm:$0x1] %vm9_vm1, %v8_v16  }
  0x78   :  { %v14_v18 = vpop.permute.xlu0 %13   ;;  %v26_v19 = vpop.permute.xlu1 %25  }
  0x79   :  { %16 = vst.msk [vmem:[#allocation0] sm:$0x1] %vm15_vm2, %v14_v18  }
  0x7a   :  { %22 = vst.msk [vmem:[#allocation0] sm:$0x1] %vm21_vm3, %v20_v17  }
  0x7b   :  { %28 = vst.msk [vmem:[#allocation0] sm:$0x1] %vm27_vm4, %v26_v19  }
  0x7c   :  { %v32_v20 = vpop.permute.xlu0 %31   ;;  %v38_v21 = vpop.permute.xlu1 %37  }
  0x7d   :  { %34 = vst.msk [vmem:[#allocation0] sm:$0x1] %vm33_vm5, %v32_v20  }
  0x7e   :  { %40 = vst.msk [vmem:[#allocation0] sm:$0x1] %vm39_vm6, %v38_v21  }
  0x80   :  { %v44_v22 = vpop.permute.xlu0 %43   ;;  %v50_v23 = vpop.permute.xlu1 %49  }
  0x81   :  { %46 = vst.msk [vmem:[#allocation0] sm:$0x1] %vm45_vm7, %v44_v22  }
  0x82   :  { %52 = vst.msk [vmem:[#allocation0] sm:$0x1] %vm51_vm8, %v50_v23  }
  0x84   :  { %v56_v24 = vpop.permute.xlu0 %55   ;;  %v62_v25 = vpop.permute.xlu1 %61  }
  0x85   :  { %58 = vst.msk [vmem:[#allocation0] sm:$0x1] %vm57_vm9, %v56_v24  }
  0x86   :  { %64 = vst.msk [vmem:[#allocation0] sm:$0x1] %vm63_vm10, %v62_v25  }
  0x88   :  { %v68_v26 = vpop.permute.xlu0 %67   ;;  %v74_v27 = vpop.permute.xlu1 %73  }
  0x89   :  { %70 = vst.msk [vmem:[#allocation0] sm:$0x1] %vm69_vm11, %v68_v26  }
  0x8a   :  { %76 = vst.msk [vmem:[#allocation0] sm:$0x1] %vm75_vm12, %v74_v27  }
  0x8c   :  { %v80_v28 = vpop.permute.xlu0 %79   ;;  %v86_v29 = vpop.permute.xlu1 %85  }
  0x8d   :  { %82 = vst.msk [vmem:[#allocation0] sm:$0x1] %vm81_vm13, %v80_v28  }
  0x8e   :  { %88 = vst.msk [vmem:[#allocation0] sm:$0x1] %vm87_vm14, %v86_v29  }
  0x90   :  { %v92_v30 = vpop.permute.xlu0 %91  }
  0x91   :  { %94 = vst.msk [vmem:[#allocation0] sm:$0x1] %vm93_vm15, %v92_v30  }
  0x98   :  { %v98_v31 = vld [vmem:[#allocation0] sm:$0x1] }
  0x99   :  { %100 = vst [vmem:[%s208_s1] sm:$0x1] %v98_v31 }

// kernel: resblock_forward.1
= control target key start
LH: loop header
LB: loop body
LE: loop exit
PB: predicated region body
PF: predicated region fallthrough
CT: control target
= control target key end

     0   :  { %s1452_s24 = smov 4   ;;  %vm40_vm0 = vcmask 31744   ;;  %vm45_vm1 = vcmask 556032   ;;  %vm54_vm2 = vcmask 1040384   ;;  %vm811_vm4 = vcmask 523264   ;;  %s1878_s0 = inlined_call_operand.vmem [shape: f32[2,16,64], index: 0, kind: input, shape index: {}]   ;;  %s1879_s1 = inlined_call_operand.vmem [shape: f32[3,128,64], index: 1, kind: input, shape index: {}]   ;;  %s1880_s3 = inlined_call_operand.vmem [shape: f32[3,128,64], index: 3, kind: input, shape index: {}]   ;;  %s1881_s2 = inlined_call_operand.vmem [shape: f32[1,64], index: 2, kind: input, shape index: {}]   ;;  %s1882_s4 = inlined_call_operand.vmem [shape: f32[1,64], index: 4, kind: input, shape index: {}]   ;;  %s1883_s5 = inlined_call_operand.vmem [shape: f32[1,16,128], index: 5, kind: output, shape index: {}]  }
   0x1   :  { %v1487_v0 = vld [vmem:[%s1878_s0] sm:$0xff]  ;;  %v1492_v1 = vld [vmem:[%s1878_s0 + $0x10] sm:$0xff]  ;;  %v1497_v2 = vld [vmem:[%s1878_s0 + $0x8] sm:$0xff] }
   0x2   :  { %28 = vrot.lane.b32.xlu0 %v1487_v0, %s1452_s24  ;;  %32 = vrot.lane.b32.xlu1 %v1492_v1, %s1452_s24  ;;  %v1506_v3 = vld [vmem:[%s1878_s0 + $0x18] sm:$0xff]  ;;  %v820_v4 = vld [vmem:[%s1879_s1 + $0x80] sm:$0xff]  ;;  %vm1606_vm3 = vmneg %vm54_vm2 }
   0x3   :  { %v821_v5 = vld [vmem:[%s1879_s1 + $0x88] sm:$0xff]  ;;  %v822_v6 = vld [vmem:[%s1879_s1 + $0x90] sm:$0xff]  ;;  %v823_v7 = vld [vmem:[%s1879_s1 + $0x98] sm:$0xff] }
   0x4   :  { %v1234_v8 = vpack.c.bf16 %v821_v5, %v820_v4  ;;  %v1238_v9 = vpack.c.bf16 %v823_v7, %v822_v6  ;;  %v824_v10 = vld [vmem:[%s1879_s1 + $0xa0] sm:$0xff]  ;;  %v825_v11 = vld [vmem:[%s1879_s1 + $0xa8] sm:$0xff]  ;;  %v826_v13 = vld [vmem:[%s1879_s1 + $0xb0] sm:$0xff] }
   0x5   :  { %v1242_v12 = vpack.c.bf16 %v825_v11, %v824_v10  ;;  %v827_v14 = vld [vmem:[%s1879_s1 + $0xb8] sm:$0xff]  ;;  %v828_v16 = vld [vmem:[%s1879_s1 + $0xc0] sm:$0xff]  ;;  %v829_v17 = vld [vmem:[%s1879_s1 + $0xc8] sm:$0xff] }
   0x6   :  { %30 = vrot.lane.b32.xlu0 %v1497_v2, %s1452_s24  ;;  %34 = vrot.lane.b32.xlu1 %v1506_v3, %s1452_s24  ;;  %v1246_v15 = vpack.c.bf16 %v827_v14, %v826_v13  ;;  %v1250_v18 = vpack.c.bf16 %v829_v17, %v828_v16  ;;  %v830_v19 = vld [vmem:[%s1879_s1 + $0xd0] sm:$0xff]  ;;  %v831_v20 = vld [vmem:[%s1879_s1 + $0xd8] sm:$0xff] }
   0x7   :  { %1235 = vmatprep.subr.bf16.mxu0 %v1234_v8  ;;  %v1254_v21 = vpack.c.bf16 %v831_v20, %v830_v19  ;;  %v832_v22 = vld [vmem:[%s1879_s1 + $0xe0] sm:$0xff]  ;;  %v833_v23 = vld [vmem:[%s1879_s1 + $0xe8] sm:$0xff]  ;;  %v834_v25 = vld [vmem:[%s1879_s1 + $0xf0] sm:$0xff] }
   0x8   :  { %1237 = vmatpush3.bf16.msra.mxu0 %v1234_v8  ;;  %v1258_v24 = vpack.c.bf16 %v833_v23, %v832_v22  ;;  %v835_v26 = vld [vmem:[%s1879_s1 + $0xf8] sm:$0xff]  ;;  %v81_v28 = vld [vmem:[%s1879_s1] sm:$0xff]  ;;  %v82_v29 = vld [vmem:[%s1879_s1 + $0x8] sm:$0xff] }
   0x9   :  { %1239 = vmatprep.subr.bf16.mxu0 %v1238_v9  ;;  %v1262_v27 = vpack.c.bf16 %v835_v26, %v834_v25  ;;  %v1266_v30 = vpack.c.bf16 %v82_v29, %v81_v28  ;;  %v83_v53 = vld [vmem:[%s1879_s1 + $0x10] sm:$0xff]  ;;  %v84_v54 = vld [vmem:[%s1879_s1 + $0x18] sm:$0xff]  ;;  %v85_v59 = vld [vmem:[%s1879_s1 + $0x20] sm:$0xff] }
   0xa   :  { %v1270_v58 = vpack.c.bf16 %v84_v54, %v83_v53  ;;  %v86_v60 = vld [vmem:[%s1879_s1 + $0x28] sm:$0xff]  ;;  %v87_v63 = vld [vmem:[%s1879_s1 + $0x30] sm:$0xff]  ;;  %v88_v4 = vld [vmem:[%s1879_s1 + $0x38] sm:$0xff] }
   0xb   :  { %v1274_v62 = vpack.c.bf16 %v86_v60, %v85_v59  ;;  %v1278_v6 = vpack.c.bf16 %v88_v4, %v87_v63  ;;  %v89_v7 = vld [vmem:[%s1879_s1 + $0x40] sm:$0xff]  ;;  %v90_v8 = vld [vmem:[%s1879_s1 + $0x48] sm:$0xff]  ;;  %v91_v10 = vld [vmem:[%s1879_s1 + $0x50] sm:$0xff] }
   0xc   :  { %1241 = vmatpush3.bf16.msra.mxu0 %v1238_v9  ;;  %v1282_v9 = vpack.c.bf16 %v90_v8, %v89_v7  ;;  %v92_v11 = vld [vmem:[%s1879_s1 + $0x58] sm:$0xff]  ;;  %v93_v13 = vld [vmem:[%s1879_s1 + $0x60] sm:$0xff]  ;;  %v94_v14 = vld [vmem:[%s1879_s1 + $0x68] sm:$0xff] }
   0xd   :  { %1243 = vmatprep.subr.bf16.mxu0 %v1242_v12  ;;  %v95_v16 = vld [vmem:[%s1879_s1 + $0x70] sm:$0xff]  ;;  %v96_v17 = vld [vmem:[%s1879_s1 + $0x78] sm:$0xff]  ;;  %v836_v19 = vld [vmem:[%s1879_s1 + $0x100] sm:$0xff] }
   0xe   :  { %v837_v20 = vld [vmem:[%s1879_s1 + $0x108] sm:$0xff]  ;;  %v838_v22 = vld [vmem:[%s1879_s1 + $0x110] sm:$0xff]  ;;  %v839_v23 = vld [vmem:[%s1879_s1 + $0x118] sm:$0xff] }
   0xf   :  { %v840_v25 = vld [vmem:[%s1879_s1 + $0x120] sm:$0xff]  ;;  %v841_v26 = vld [vmem:[%s1879_s1 + $0x128] sm:$0xff]  ;;  %v842_v28 = vld [vmem:[%s1879_s1 + $0x130] sm:$0xff] }
  0x10   :  { %1245 = vmatpush3.bf16.msra.mxu0 %v1242_v12  ;;  %v1286_v12 = vpack.c.bf16 %v92_v11, %v91_v10  ;;  %v843_v29 = vld [vmem:[%s1879_s1 + $0x138] sm:$0xff]  ;;  %v857_v53 = vld [vmem:[%s1880_s3 + $0xa0] sm:$0xff]  ;;  %v858_v54 = vld [vmem:[%s1880_s3 + $0xa8] sm:$0xff] }
  0x11   :  { %1247 = vmatprep.subr.bf16.mxu0 %v1246_v15  ;;  %v861_v59 = vld [vmem:[%s1880_s3 + $0xc0] sm:$0xff]  ;;  %v862_v60 = vld [vmem:[%s1880_s3 + $0xc8] sm:$0xff]  ;;  %v864_v63 = vld [vmem:[%s1880_s3 + $0xd8] sm:$0xff] }
  0x12   :  { %v866_v7 = vld [vmem:[%s1880_s3 + $0xe8] sm:$0xff]  ;;  %v867_v10 = vld [vmem:[%s1880_s3 + $0xf0] sm:$0xff]  ;;  %v868_v11 = vld [vmem:[%s1880_s3 + $0xf8] sm:$0xff] }
  0x13   :  { %v877_v5 = vld [vmem:[%s1880_s3 + $0x140] sm:$0xff] }
  0x14   :  { %1249 = vmatpush3.bf16.msra.mxu0 %v1246_v15  ;;  %v1290_v15 = vpack.c.bf16 %v94_v14, %v93_v13  ;;  %v1358_v13 = vpack.c.bf16 %v868_v11, %v867_v10  ;;  %v479_v10 = vld [vmem:[%s1880_s3 + $0x60] sm:$0xff]  ;;  %v480_v11 = vld [vmem:[%s1880_s3 + $0x68] sm:$0xff] }
  0x15   :  { %1251 = vmatprep.subr.bf16.mxu0 %v1250_v18 }
  0x18   :  { %1253 = vmatpush3.bf16.msra.mxu0 %v1250_v18  ;;  %v1294_v18 = vpack.c.bf16 %v96_v17, %v95_v16 }
  0x19   :  { %1255 = vmatprep.subr.bf16.mxu0 %v1254_v21 }
  0x1c   :  { %1257 = vmatpush3.bf16.msra.mxu0 %v1254_v21  ;;  %v1298_v21 = vpack.c.bf16 %v837_v20, %v836_v19  ;;  %v468_v19 = vld [vmem:[%s1880_s3 + $0x8] sm:$0xff] }
  0x1d   :  { %1259 = vmatprep.subr.bf16.mxu0 %v1258_v24 }
  0x20   :  { %1261 = vmatpush3.bf16.msra.mxu0 %v1258_v24  ;;  %v1302_v24 = vpack.c.bf16 %v839_v23, %v838_v22 }
  0x21   :  { %1263 = vmatprep.subr.bf16.mxu0 %v1262_v27 }
  0x24   :  { %1265 = vmatpush3.bf16.msra.mxu0 %v1262_v27  ;;  %v1306_v27 = vpack.c.bf16 %v841_v26, %v840_v25 }
  0x25   :  { %1267 = vmatprep.subr.bf16.mxu0 %v1266_v30 }
  0x74   :  { %v29_v31 = vpop.permute.xlu0 %28  ;;  %v33_v32 = vpop.permute.xlu1 %32 }
  0x75   :  { %v41_v33 = vsel %vm40_vm0, 0.0, %v29_v31  ;;  %v43_v34 = vsel %vm40_vm0, 0.0, %v33_v32  ;;  %v1310_v31 = vpack.c.bf16 %v843_v29, %v842_v28  ;;  %v844_v32 = vld [vmem:[%s1879_s1 + $0x140] sm:$0xff] }
  0x76   :  { %v46_v35 = vsel %vm45_vm1, %v41_v33, 0.0  ;;  %v48_v36 = vsel %vm45_vm1, %v43_v34, 0.0  ;;  %v845_v33 = vld [vmem:[%s1879_s1 + $0x148] sm:$0xff] }
  0x77   :  { %v55_v37 = vrot.slane %v46_v35, 7  ;;  %v1570_v38 = vrot.slane %v48_v36, 7  ;;  %v1314_v34 = vpack.c.bf16 %v845_v33, %v844_v32  ;;  %v846_v35 = vld [vmem:[%s1879_s1 + $0x150] sm:$0xff]  ;;  %v847_v36 = vld [vmem:[%s1879_s1 + $0x158] sm:$0xff] }
  0x78   :  { %v31_v39 = vpop.permute.xlu0 %30  ;;  %v35_v40 = vpop.permute.xlu1 %34 }
  0x79   :  { %v67_v41 = vsel %vm54_vm2, 0.0, %v55_v37  ;;  %v68_v42 = vsel %vm54_vm2, 0.0, %v1570_v38  ;;  %v42_v43 = vsel %vm40_vm0, 0.0, %v31_v39  ;;  %v44_v44 = vsel %vm40_vm0, 0.0, %v35_v40  ;;  %v849_v39 = vld [vmem:[%s1879_s1 + $0x168] sm:$0xff] }
  0x7a   :  { %71 = vst [vmem:[#allocation2] sm:$0xff] %v67_v41  ;;  %74 = vst [vmem:[#allocation2 + $0x18] sm:$0xff] %v68_v42  ;;  %v47_v45 = vsel %vm45_vm1, %v42_v43, 0.0  ;;  %v49_v46 = vsel %vm45_vm1, %v44_v44, 0.0  ;;  %v850_v41 = vld [vmem:[%s1879_s1 + $0x170] sm:$0xff]  ;;  %v851_v42 = vld [vmem:[%s1879_s1 + $0x178] sm:$0xff] }
  0x7b   :  { %v56_v47 = vrot.slane %v47_v45, 7  ;;  %v59_v48 = vrot.slane %v49_v46, 7  ;;  %v1326_v43 = vpack.c.bf16 %v851_v42, %v850_v41 }
  0x7d   :  { %v57_v49 = vsel %vm54_vm2, %v55_v37, %v56_v47  ;;  %v69_v50 = vsel %vm54_vm2, %v56_v47, 0.0  ;;  %v1583_v51 = vsel %vm54_vm2, %v1570_v38, %v59_v48  ;;  %v70_v52 = vsel %vm54_vm2, %v59_v48, 0.0  ;;  %v853_v47 = vld [vmem:[%s1880_s3 + $0x80] sm:$0xff]  ;;  %v854_v48 = vld [vmem:[%s1880_s3 + $0x88] sm:$0xff] }
  0x7e   :  { %72 = vst [vmem:[#allocation2 + $0x8] sm:$0xff] %v57_v49  ;;  %73 = vst [vmem:[#allocation2 + $0x10] sm:$0x3] %v69_v50  ;;  %v1330_v50 = vpack.c.bf16 %v854_v48, %v853_v47 }
  0x7f   :  { %75 = vst [vmem:[#allocation2 + $0x20] sm:$0xff] %v1583_v51  ;;  %76 = vst [vmem:[#allocation2 + $0x28] sm:$0x3] %v70_v52 }
  0x80   :  { %1331 = vmatprep.subr.bf16.mxu1 %v1330_v50 }
  0x81   :  { %1333 = vmatpush3.bf16.msra.mxu1 %v1330_v50  ;;  %v469_v50 = vld [vmem:[%s1880_s3 + $0x10] sm:$0xff] }
  0x85   :  { %v97_v55 = vld [vmem:[#allocation2 + $0x1] sm:$0xff]  ;;  %v98_v56 = vld [vmem:[#allocation2 + $0x9] sm:$0xff] }
  0x86   :  { %v99_v57 = vld [vmem:[#allocation2 + $0x19] sm:$0xff]  ;;  %1038 = vmatprep.mubr.f32.mxu0 %v97_v55  ;;  %v100_v61 = vld [vmem:[#allocation2 + $0x21] sm:$0xff]  ;;  %v289_v44 = vld [vmem:[#allocation2 + $0xa] sm:$0xff]  ;;  %v1338_v55 = vpack.c.bf16 %v858_v54, %v857_v53 }
  0x87   :  { %1039 = vmatmul.mubr.f32.vlgmr.msra.gmra.mrb[0].mxu0 %v98_v56  ;;  %v290_v45 = vld [vmem:[#allocation2 + $0x1a] sm:$0xff]  ;;  %v291_v46 = vld [vmem:[#allocation2 + $0x22] sm:$0xff]  ;;  %v859_v56 = vld [vmem:[%s1880_s3 + $0xb0] sm:$0xff] }
  0x88   :  { %1269 = vmatpush3.bf16.msra.mxu0 %v1266_v30  ;;  %1041 = vmatprep.mubr.f32.mxu0 %v99_v57  ;;  %v288_v30 = vld [vmem:[#allocation2 + $0x2] sm:$0xff]  ;;  %v860_v57 = vld [vmem:[%s1880_s3 + $0xb8] sm:$0xff] }
  0x89   :  { %1271 = vmatprep.subr.bf16.mxu0 %v1270_v58 }
  0x8b   :  { %1042 = vmatmul.mubr.f32.gmra.mrb[2].mxu0 %v100_v61  ;;  %v1346_v61 = vpack.c.bf16 %v862_v60, %v861_v59  ;;  %v473_v60 = vld [vmem:[%s1880_s3 + $0x30] sm:$0xff] }
  0x8c   :  { %1273 = vmatpush3.bf16.msra.mxu0 %v1270_v58  ;;  %1445 = vmatprep.mubr.msk.f32.mxu0 %vm1606_vm3, %v55_v37  ;;  %v1318_v37 = vpack.c.bf16 %v847_v36, %v846_v35  ;;  %v1342_v58 = vpack.c.bf16 %v860_v57, %v859_v56  ;;  %v472_v56 = vld [vmem:[%s1880_s3 + $0x28] sm:$0xff] }
  0x8d   :  { %1275 = vmatprep.subr.bf16.mxu0 %v1274_v62 }
  0x90   :  { %1277 = vmatpush3.bf16.msra.mxu0 %v1274_v62  ;;  %v863_v62 = vld [vmem:[%s1880_s3 + $0xd0] sm:$0xff] }
  0x91   :  { %1279 = vmatprep.subr.bf16.mxu0 %v1278_v6  ;;  %v1350_v4 = vpack.c.bf16 %v864_v63, %v863_v62  ;;  %v475_v63 = vld [vmem:[%s1880_s3 + $0x40] sm:$0xff] }
  0x94   :  { %1281 = vmatpush3.bf16.msra.mxu0 %v1278_v6  ;;  %v865_v6 = vld [vmem:[%s1880_s3 + $0xe0] sm:$0xff] }
  0x95   :  { %1283 = vmatprep.subr.bf16.mxu0 %v1282_v9  ;;  %v1354_v8 = vpack.c.bf16 %v866_v7, %v865_v6  ;;  %v477_v7 = vld [vmem:[%s1880_s3 + $0x50] sm:$0xff] }
  0x98   :  { %1285 = vmatpush3.bf16.msra.mxu0 %v1282_v9  ;;  %v852_v9 = vld [vmem:[%s1881_s2] ss:$0 sm:$0xff] }
  0x99   :  { %1287 = vmatprep.subr.bf16.mxu0 %v1286_v12 }
  0x9c   :  { %1289 = vmatpush3.bf16.msra.mxu0 %v1286_v12 }
  0x9d   :  { %1291 = vmatprep.subr.bf16.mxu0 %v1290_v15 }
  0xa0   :  { %1293 = vmatpush3.bf16.msra.mxu0 %v1290_v15 }
  0xa1   :  { %1295 = vmatprep.subr.bf16.mxu0 %v1294_v18 }
  0xa4   :  { %1297 = vmatpush3.bf16.msra.mxu0 %v1294_v18  ;;  %v467_v18 = vld [vmem:[%s1880_s3] sm:$0xff] }
  0xa5   :  { %1299 = vmatprep.subr.bf16.mxu0 %v1298_v21  ;;  %v1362_v22 = vpack.c.bf16 %v468_v19, %v467_v18  ;;  %v871_v19 = vld [vmem:[%s1880_s3 + $0x110] sm:$0xff] }
  0xa7   :  { %1077 = vmatmul.mubr.f32.vlgmr.msra.gmra.mrb[0].mxu0 %v57_v49  ;;  %v855_v49 = vld [vmem:[%s1880_s3 + $0x90] sm:$0xff] }
  0xa8   :  { %1447 = vmatprep.mubr.msk.f32.mxu0 %vm1606_vm3, %v1570_v38  ;;  %1301 = vmatpush3.bf16.msra.mxu0 %v1298_v21  ;;  %v848_v38 = vld [vmem:[%s1879_s1 + $0x160] sm:$0xff] }
  0xa9   :  { %1303 = vmatprep.subr.bf16.mxu0 %v1302_v24  ;;  %v1322_v40 = vpack.c.bf16 %v849_v39, %v848_v38 }
  0xab   :  { %1080 = vmatmul.mubr.f32.gmra.mrb[2].mxu0 %v1583_v51  ;;  %v856_v51 = vld [vmem:[%s1880_s3 + $0x98] sm:$0xff] }
  0xac   :  { %1305 = vmatpush3.bf16.msra.mxu0 %v1302_v24  ;;  %1114 = vmatprep.mubr.f32.mxu0 %v288_v30  ;;  %v1334_v52 = vpack.c.bf16 %v856_v51, %v855_v49  ;;  %v470_v51 = vld [vmem:[%s1880_s3 + $0x18] sm:$0xff] }
  0xad   :  { %1307 = vmatprep.subr.bf16.mxu0 %v1306_v27  ;;  %v1366_v54 = vpack.c.bf16 %v470_v51, %v469_v50 }
  0xae   :  { %1335 = vmatprep.subr.bf16.mxu1 %v1334_v52 }
  0xaf   :  { %1337 = vmatpush3.bf16.msra.mxu1 %v1334_v52 }
  0xb0   :  { %1309 = vmatpush3.bf16.msra.mxu0 %v1306_v27  ;;  %1339 = vmatprep.subr.bf16.mxu1 %v1338_v55 }
  0xb1   :  { %1311 = vmatprep.subr.bf16.mxu0 %v1310_v31 }
  0xb3   :  { %1341 = vmatpush3.bf16.msra.mxu1 %v1338_v55  ;;  %v471_v55 = vld [vmem:[%s1880_s3 + $0x20] sm:$0xff] }
  0xb4   :  { %1313 = vmatpush3.bf16.msra.mxu0 %v1310_v31  ;;  %1343 = vmatprep.subr.bf16.mxu1 %v1342_v58  ;;  %v1370_v59 = vpack.c.bf16 %v472_v56, %v471_v55 }
  0xb5   :  { %1315 = vmatprep.subr.bf16.mxu0 %v1314_v34 }
  0xb7   :  { %1345 = vmatpush3.bf16.msra.mxu1 %v1342_v58 }
  0xb8   :  { %1317 = vmatpush3.bf16.msra.mxu0 %v1314_v34  ;;  %1347 = vmatprep.subr.bf16.mxu1 %v1346_v61 }
  0xb9   :  { %1319 = vmatprep.subr.bf16.mxu0 %v1318_v37 }
  0xbb   :  { %1349 = vmatpush3.bf16.msra.mxu1 %v1346_v61  ;;  %v474_v61 = vld [vmem:[%s1880_s3 + $0x38] sm:$0xff] }
  0xbc   :  { %1321 = vmatpush3.bf16.msra.mxu0 %v1318_v37  ;;  %1351 = vmatprep.subr.bf16.mxu1 %v1350_v4  ;;  %v1374_v62 = vpack.c.bf16 %v474_v61, %v473_v60 }
  0xbd   :  { %1323 = vmatprep.subr.bf16.mxu0 %v1322_v40 }
  0xbf   :  { %1353 = vmatpush3.bf16.msra.mxu1 %v1350_v4  ;;  %v476_v4 = vld [vmem:[%s1880_s3 + $0x48] sm:$0xff] }
  0xc0   :  { %1325 = vmatpush3.bf16.msra.mxu0 %v1322_v40  ;;  %1355 = vmatprep.subr.bf16.mxu1 %v1354_v8  ;;  %v1378_v6 = vpack.c.bf16 %v476_v4, %v475_v63 }
  0xc1   :  { %1327 = vmatprep.subr.bf16.mxu0 %v1326_v43 }
  0xc3   :  { %1357 = vmatpush3.bf16.msra.mxu1 %v1354_v8  ;;  %v478_v8 = vld [vmem:[%s1880_s3 + $0x58] sm:$0xff] }
  0xc4   :  { %1329 = vmatpush3.bf16.msra.mxu0 %v1326_v43  ;;  %1359 = vmatprep.subr.bf16.mxu1 %v1358_v13 }
  0xc7   :  { %1115 = vmatmul.mubr.f32.vlgmr.msra.gmra.mrb[0].mxu0 %v289_v44  ;;  %1361 = vmatpush3.bf16.msra.mxu1 %v1358_v13  ;;  %v481_v13 = vld [vmem:[%s1880_s3 + $0x70] sm:$0xff] }
  0xc8   :  { %1117 = vmatprep.mubr.f32.mxu0 %v290_v45  ;;  %1363 = vmatprep.subr.bf16.mxu1 %v1362_v22 }
  0xcb   :  { %1118 = vmatmul.mubr.f32.gmra.mrb[2].mxu0 %v291_v46 }
 0x19a   :  { %v1116_v12 = vpop.f32.mrb[0].mxu0 }
 0x19b   :  { %v406_v14 = vadd.f32 %v1116_v12, %v852_v9  ;;  %v375_v15 = vpop.f32.mrb[1].mxu0  ;;  %v1386_v12 = vpack.c.bf16 %v480_v11, %v479_v10 }
 0x19c   :  { %v405_v16 = vadd.f32 %v852_v9, %v375_v15 }
 0x19d   :  { %v410_v17 = vmax.f32 %v406_v14, 0.0  ;;  %v482_v14 = vld [vmem:[%s1880_s3 + $0x78] sm:$0xff] }
 0x19e   :  { %v409_v20 = vmax.f32 %v405_v16, 0.0  ;;  %v1119_v21 = vpop.f32.mrb[2].mxu0  ;;  %v1390_v15 = vpack.c.bf16 %v482_v14, %v481_v13  ;;  %v869_v16 = vld [vmem:[%s1880_s3 + $0x100] sm:$0xff] }
 0x19f   :  { %v408_v23 = vadd.f32 %v1119_v21, %v852_v9  ;;  %419 = vrot.lane.b32.xlu1 %v410_v17, %s1452_s24  ;;  %v385_v24 = vpop.f32.mrb[3].mxu0  ;;  %v870_v17 = vld [vmem:[%s1880_s3 + $0x108] sm:$0xff] }
 0x1a0   :  { %v407_v25 = vadd.f32 %v852_v9, %v385_v24  ;;  %417 = vrot.lane.b32.xlu0 %v409_v20, %s1452_s24  ;;  %v1382_v9 = vpack.c.bf16 %v478_v8, %v477_v7  ;;  %v1394_v18 = vpack.c.bf16 %v870_v17, %v869_v16  ;;  %v872_v20 = vld [vmem:[%s1880_s3 + $0x118] sm:$0xff] }
 0x1a1   :  { %v412_v26 = vmax.f32 %v408_v23, 0.0  ;;  %v1398_v21 = vpack.c.bf16 %v872_v20, %v871_v19  ;;  %v874_v23 = vld [vmem:[%s1880_s3 + $0x128] sm:$0xff] }
 0x1a2   :  { %v411_v27 = vmax.f32 %v407_v25, 0.0  ;;  %v875_v25 = vld [vmem:[%s1880_s3 + $0x130] sm:$0xff] }
 0x1a3   :  { %423 = vrot.lane.b32.xlu1 %v412_v26, %s1452_s24  ;;  %v876_v26 = vld [vmem:[%s1880_s3 + $0x138] sm:$0xff] }
 0x1a4   :  { %421 = vrot.lane.b32.xlu0 %v411_v27, %s1452_s24 }
 0x211   :  { %v420_v28 = vpop.permute.xlu1 %419 }
 0x212   :  { %v430_v29 = vsel %vm40_vm0, 0.0, %v420_v28  ;;  %v418_v30 = vpop.permute.xlu0 %417  ;;  %v1406_v28 = vpack.c.bf16 %v876_v26, %v875_v25 }
 0x213   :  { %v434_v31 = vsel %vm45_vm1, %v430_v29, 0.0  ;;  %v429_v32 = vsel %vm40_vm0, 0.0, %v418_v30  ;;  %v878_v29 = vld [vmem:[%s1880_s3 + $0x148] sm:$0xff] }
 0x214   :  { %v442_v33 = vrot.slane %v434_v31, 7  ;;  %v433_v34 = vsel %vm45_vm1, %v429_v32, 0.0  ;;  %v1410_v30 = vpack.c.bf16 %v878_v29, %v877_v5  ;;  %v879_v31 = vld [vmem:[%s1880_s3 + $0x150] sm:$0xff]  ;;  %v880_v32 = vld [vmem:[%s1880_s3 + $0x158] sm:$0xff] }
 0x215   :  { %v441_v35 = vrot.slane %v433_v34, 7  ;;  %v424_v36 = vpop.permute.xlu1 %423  ;;  %v881_v34 = vld [vmem:[%s1880_s3 + $0x160] sm:$0xff] }
 0x216   :  { %v455_v37 = vsel %vm54_vm2, %v442_v33, 0.0  ;;  %v432_v38 = vsel %vm40_vm0, 0.0, %v424_v36  ;;  %v422_v39 = vpop.permute.xlu0 %421 }
 0x217   :  { %459 = vst [vmem:[#allocation3 + $0x10] sm:$0x3] %v455_v37  ;;  %v1756_v40 = vsel %vm54_vm2, %v441_v35, %v442_v33  ;;  %v453_v41 = vsel %vm54_vm2, 0.0, %v441_v35  ;;  %v436_v42 = vsel %vm45_vm1, %v432_v38, 0.0  ;;  %v431_v43 = vsel %vm40_vm0, 0.0, %v422_v39  ;;  %v883_v37 = vld [vmem:[%s1880_s3 + $0x170] sm:$0xff] }
 0x218   :  { %457 = vst [vmem:[#allocation3] sm:$0xff] %v453_v41  ;;  %458 = vst [vmem:[#allocation3 + $0x8] sm:$0xff] %v1756_v40  ;;  %v445_v44 = vrot.slane %v436_v42, 7  ;;  %v435_v45 = vsel %vm45_vm1, %v431_v43, 0.0  ;;  %v1414_v33 = vpack.c.bf16 %v880_v32, %v879_v31  ;;  %v884_v38 = vld [vmem:[%s1880_s3 + $0x178] sm:$0xff] }
 0x219   :  { %v444_v46 = vrot.slane %v435_v45, 7  ;;  %v1422_v39 = vpack.c.bf16 %v884_v38, %v883_v37  ;;  %v885_v43 = vld [vmem:[%s1882_s4] ss:$0 sm:$0xff] }
 0x21a   :  { %v456_v47 = vsel %vm54_vm2, %v445_v44, 0.0 }
 0x21b   :  { %462 = vst [vmem:[#allocation3 + $0x28] sm:$0x3] %v456_v47  ;;  %v1765_v48 = vsel %vm54_vm2, %v444_v46, %v445_v44  ;;  %v454_v49 = vsel %vm54_vm2, 0.0, %v444_v46 }
 0x21c   :  { %460 = vst [vmem:[#allocation3 + $0x18] sm:$0xff] %v454_v49  ;;  %461 = vst [vmem:[#allocation3 + $0x20] sm:$0xff] %v1765_v48 }
 0x21f   :  { %v483_v52 = vld [vmem:[#allocation3 + $0x1] sm:$0xff]  ;;  %v484_v53 = vld [vmem:[#allocation3 + $0x9] sm:$0xff] }
 0x220   :  { %1152 = vmatprep.mubr.f32.mxu1 %v483_v52  ;;  %v674_v27 = vld [vmem:[#allocation3 + $0x2] sm:$0xff] }
 0x221   :  { %1153 = vmatmul.mubr.f32.vlgmr.msra.gmra.mrb[0].mxu1 %v484_v53 }
 0x222   :  { %1365 = vmatpush3.bf16.msra.mxu1 %v1362_v22  ;;  %v873_v22 = vld [vmem:[%s1880_s3 + $0x120] sm:$0xff] }
 0x223   :  { %v485_v57 = vld [vmem:[#allocation3 + $0x19] sm:$0xff]  ;;  %1367 = vmatprep.subr.bf16.mxu1 %v1366_v54  ;;  %v486_v58 = vld [vmem:[#allocation3 + $0x21] sm:$0xff]  ;;  %v1402_v24 = vpack.c.bf16 %v874_v23, %v873_v22 }
 0x224   :  { %1155 = vmatprep.mubr.f32.mxu1 %v485_v57  ;;  %v676_v41 = vld [vmem:[#allocation3 + $0x1a] sm:$0xff]  ;;  %v677_v42 = vld [vmem:[#allocation3 + $0x22] sm:$0xff] }
 0x225   :  { %1156 = vmatmul.mubr.f32.gmra.mrb[2].mxu1 %v486_v58 }
 0x226   :  { %1369 = vmatpush3.bf16.msra.mxu1 %v1366_v54  ;;  %1449 = vmatprep.mubr.msk.f32.mxu1 %vm1606_vm3, %v441_v35  ;;  %v882_v35 = vld [vmem:[%s1880_s3 + $0x168] sm:$0xff]  ;;  %s1453_s3 = smov 64  }
 0x227   :  { %1371 = vmatprep.subr.bf16.mxu1 %v1370_v59  ;;  %v1418_v36 = vpack.c.bf16 %v882_v35, %v881_v34 }
 0x22a   :  { %1373 = vmatpush3.bf16.msra.mxu1 %v1370_v59 }
 0x22b   :  { %1375 = vmatprep.subr.bf16.mxu1 %v1374_v62 }
 0x22e   :  { %1377 = vmatpush3.bf16.msra.mxu1 %v1374_v62 }
 0x22f   :  { %1379 = vmatprep.subr.bf16.mxu1 %v1378_v6 }
 0x232   :  { %1381 = vmatpush3.bf16.msra.mxu1 %v1378_v6 }
 0x233   :  { %1383 = vmatprep.subr.bf16.mxu1 %v1382_v9 }
 0x236   :  { %1385 = vmatpush3.bf16.msra.mxu1 %v1382_v9 }
 0x237   :  { %1387 = vmatprep.subr.bf16.mxu1 %v1386_v12 }
 0x23a   :  { %1389 = vmatpush3.bf16.msra.mxu1 %v1386_v12 }
 0x23b   :  { %1391 = vmatprep.subr.bf16.mxu1 %v1390_v15 }
 0x23e   :  { %1393 = vmatpush3.bf16.msra.mxu1 %v1390_v15 }
 0x23f   :  { %1395 = vmatprep.subr.bf16.mxu1 %v1394_v18 }
 0x241   :  { %1191 = vmatmul.mubr.f32.vlgmr.msra.gmra.mrb[0].mxu1 %v1756_v40  ;;  %v675_v40 = vld [vmem:[#allocation3 + $0xa] sm:$0xff] }
 0x242   :  { %1451 = vmatprep.mubr.msk.f32.mxu1 %vm1606_vm3, %v444_v46  ;;  %1397 = vmatpush3.bf16.msra.mxu1 %v1394_v18 }
 0x243   :  { %1399 = vmatprep.subr.bf16.mxu1 %v1398_v21 }
 0x245   :  { %1194 = vmatmul.mubr.f32.gmra.mrb[2].mxu1 %v1765_v48 }
 0x246   :  { %1401 = vmatpush3.bf16.msra.mxu1 %v1398_v21  ;;  %1228 = vmatprep.mubr.f32.mxu1 %v674_v27 }
 0x247   :  { %1403 = vmatprep.subr.bf16.mxu1 %v1402_v24 }
 0x24a   :  { %1405 = vmatpush3.bf16.msra.mxu1 %v1402_v24 }
 0x24b   :  { %1407 = vmatprep.subr.bf16.mxu1 %v1406_v28 }
 0x24e   :  { %1409 = vmatpush3.bf16.msra.mxu1 %v1406_v28 }
 0x24f   :  { %1411 = vmatprep.subr.bf16.mxu1 %v1410_v30 }
 0x252   :  { %1413 = vmatpush3.bf16.msra.mxu1 %v1410_v30 }
 0x253   :  { %1415 = vmatprep.subr.bf16.mxu1 %v1414_v33 }
 0x256   :  { %1417 = vmatpush3.bf16.msra.mxu1 %v1414_v33 }
 0x257   :  { %1419 = vmatprep.subr.bf16.mxu1 %v1418_v36 }
 0x25a   :  { %1421 = vmatpush3.bf16.msra.mxu1 %v1418_v36 }
 0x25b   :  { %1423 = vmatprep.subr.bf16.mxu1 %v1422_v39 }
 0x25e   :  { %1425 = vmatpush3.bf16.msra.mxu1 %v1422_v39 }
 0x261   :  { %1229 = vmatmul.mubr.f32.vlgmr.msra.gmra.mrb[0].mxu1 %v675_v40 }
 0x262   :  { %1231 = vmatprep.mubr.f32.mxu1 %v676_v41 }
 0x265   :  { %1232 = vmatmul.mubr.f32.gmra.mrb[2].mxu1 %v677_v42 }
 0x334   :  { %v1230_v44 = vpop.f32.mrb[0].mxu1 }
 0x335   :  { %v792_v45 = vadd.f32 %v1230_v44, %v885_v43  ;;  %v761_v46 = vpop.f32.mrb[1].mxu1 }
 0x336   :  { %v791_v47 = vadd.f32 %v885_v43, %v761_v46 }
 0x337   :  { %v796_v56 = vmax.f32 %v792_v45, 0.0 }
 0x338   :  { %v1233_v48 = vpop.f32.mrb[2].mxu1  ;;  %v795_v57 = vmax.f32 %v791_v47, 0.0 }
 0x339   :  { %v794_v49 = vadd.f32 %v1233_v48, %v885_v43  ;;  %v771_v50 = vpop.f32.mrb[3].mxu1  ;;  %v800_v58 = vadd.f32 %v796_v56, %v1497_v2 }
 0x33a   :  { %v793_v51 = vadd.f32 %v885_v43, %v771_v50  ;;  %v799_v59 = vadd.f32 %v795_v57, %v1487_v0 }
 0x33b   :  { %v798_v52 = vmax.f32 %v794_v49, 0.0 }
 0x33c   :  { %v797_v53 = vmax.f32 %v793_v51, 0.0 }
 0x33d   :  { %v802_v54 = vadd.f32 %v798_v52, %v1506_v3 }
 0x33e   :  { %v801_v55 = vadd.f32 %v797_v53, %v1492_v1 }
 0x33f   :  { %807 = vrot.lane.b32.xlu1 %v802_v54, %s1453_s3 }
 0x340   :  { %805 = vrot.lane.b32.xlu0 %v801_v55, %s1453_s3 }
 0x3b1   :  { %v808_v60 = vpop.permute.xlu1 %807 }
 0x3b2   :  { %v813_v61 = vsel %vm811_vm4, %v800_v58, %v808_v60  ;;  %v806_v62 = vpop.permute.xlu0 %805 }
 0x3b3   :  { %815 = vst [vmem:[%s1883_s5 + $0x8] sm:$0xff] %v813_v61  ;;  %v812_v3 = vsel %vm811_vm4, %v799_v59, %v806_v62 }
 0x3b4   :  { %814 = vst [vmem:[%s1883_s5] sm:$0xff] %v812_v3 }

</bundles_post_ra>
